<compile_context>
chip_gen: v5e
topology: v5e:2x2
jax: 0.10.0
libtpu: 0.0.40
codegen_flags: <defaults>
</compile_context>

<pallas_src>
import functools

import jax
import jax.numpy as jnp
from jax import lax
from jax.experimental import pallas as pl
from jax.experimental.pallas import tpu as pltpu


def _stats_kernel(x_ref, psum_ref, *, rows, tile_r, lanes, tiles_per_split,
                  acc_rows):
    """Accumulate per-lane partial sums of x and x^2 (f32) per split."""
    g = pl.program_id(0)          # split (parallel across TensorCores)
    i = pl.program_id(1)          # tile within the split (sequential)

    @pl.when(i == 0)
    def _():
        psum_ref[...] = jnp.zeros_like(psum_ref)

    # Logical tile index.  The index_map clamps phantom tiles onto the last
    # real tile; phantom / ragged rows are masked to zero here so they add
    # nothing to the sums (cheap VPU work, hidden under the HBM bound).
    t = g * tiles_per_split + i
    valid = rows - t * tile_r                       # <= 0 for phantom tiles
    row_ids = lax.broadcasted_iota(jnp.int32, (tile_r, lanes), 0)
    x = x_ref[...].astype(jnp.float32)              # cast per-tile, not in HBM
    x = jnp.where(row_ids < valid, x, 0.0)

    if acc_rows > 1:
        # Pure-VPU partial reduction onto a vreg-aligned (8, lanes) slab.
        s = x.reshape(tile_r // acc_rows, acc_rows, lanes).sum(axis=0)
        sq = (x * x).reshape(tile_r // acc_rows, acc_rows, lanes).sum(axis=0)
    else:
        s = jnp.sum(x, axis=0, keepdims=True)
        sq = jnp.sum(x * x, axis=0, keepdims=True)

    psum_ref[0, 0] += s
    psum_ref[0, 1] += sq


def _normalize_kernel(psum_ref, x_ref, o_ref, *, inv_n, inv_nm1):
    """o = (x - mean) * rsqrt(var); finalization fused (recomputed per step
    from the tiny resident psum block so the grid axis stays 'parallel')."""
    p = psum_ref[...]                               # (splits, 2, acc_rows, lanes) f32
    total = jnp.sum(p[:, 0])
    total_sq = jnp.sum(p[:, 1])
    mean = total * inv_n
    # Unbiased (ddof=1) variance; clamp so rsqrt never sees a tiny negative
    # produced by cancellation.  n == 1 -> NaN, matching torch.std.
    var = jnp.maximum((total_sq - total * mean) * inv_nm1, 0.0)
    inv_std = lax.rsqrt(var)
    x = x_ref[...].astype(jnp.float32)
    o_ref[...] = ((x - mean) * inv_std).astype(o_ref.dtype)


def unit_norm(x, *, tile_rows=512, max_splits=2, small_n_threshold=1 << 20):
    """Pallas UnitNorm (dim=None): (x - mean(x)) / std(x), unbiased std."""
    orig_shape = x.shape
    orig_dtype = x.dtype
    n = int(x.size)
    if n == 0:
        return x

    # Small-n fallback: two kernel launches are not worth it below ~1M elems.
    if n < small_n_threshold:
        xf32 = x.astype(jnp.float32)
        y = (xf32 - jnp.mean(xf32)) / jnp.std(xf32, ddof=1)
        return y.astype(orig_dtype).reshape(orig_shape)

    xf = x.reshape(-1)                              # free reshape, no dtype change

    # Pick a lane width that divides n so no HBM pad / output-slice pass is
    # needed.  Only n % 128 != 0 falls back to a small flat pad (extra copy).
    lanes = next((c for c in (512, 256, 128) if n % c == 0), None)
    padded = lanes is None
    if padded:
        lanes = 128
        xf = jnp.pad(xf, (0, (-n) % lanes))         # zeros: no effect on sums
    rows = xf.shape[0] // lanes
    x2 = xf.reshape(rows, lanes)

    tile_r = rows if rows <= tile_rows else tile_rows   # full dim or %8 tile
    tiles_total = pl.cdiv(rows, tile_r)
    acc_rows = 8 if tile_r % 8 == 0 else 1

    # Shard the stats reduction across TensorCores when there is enough work;
    # the per-split accumulator axis itself must stay "arbitrary".
    n_splits = max_splits if tiles_total >= 2 * max_splits else 1
    tiles_per_split = pl.cdiv(tiles_total, n_splits)

    buffered = pl.Buffered(3) if tiles_total >= 3 else None

    def tile_spec(index_map):
        if buffered is None:
            return pl.BlockSpec((tile_r, lanes), index_map)
        return pl.BlockSpec((tile_r, lanes), index_map, pipeline_mode=buffered)

    # ---- Pass 1: per-lane / per-split partial sums of x and x^2 -------------
    def stats_x_map(g, i):
        # Clamp phantom tiles (past the end) onto the last real tile; their
        # contribution is masked to zero inside the kernel.
        return (jnp.minimum(g * tiles_per_split + i, tiles_total - 1), 0)

    psum = pl.pallas_call(
        functools.partial(_stats_kernel, rows=rows, tile_r=tile_r, lanes=lanes,
                          tiles_per_split=tiles_per_split, acc_rows=acc_rows),
        out_shape=jax.ShapeDtypeStruct((n_splits, 2, acc_rows, lanes),
                                       jnp.float32),
        grid_spec=pltpu.PrefetchScalarGridSpec(
            num_scalar_prefetch=0,
            grid=(n_splits, tiles_per_split),
            in_specs=[tile_spec(stats_x_map)],
            out_specs=pl.BlockSpec((1, 2, acc_rows, lanes),
                                   lambda g, i: (g, 0, 0, 0)),
        ),
        compiler_params=pltpu.CompilerParams(
            dimension_semantics=("parallel", "arbitrary")),
    )(x2)

    # ---- Pass 2: lane-dense elementwise normalize (finalization fused) ------
    inv_n = 1.0 / n
    inv_nm1 = (1.0 / (n - 1)) if n > 1 else float("nan")   # torch.std(n==1)=NaN

    out2 = pl.pallas_call(
        functools.partial(_normalize_kernel, inv_n=inv_n, inv_nm1=inv_nm1),
        out_shape=jax.ShapeDtypeStruct((rows, lanes), orig_dtype),
        grid_spec=pltpu.PrefetchScalarGridSpec(
            num_scalar_prefetch=0,
            grid=(tiles_total,),
            in_specs=[
                pl.BlockSpec((n_splits, 2, acc_rows, lanes),
                             lambda i: (0, 0, 0, 0)),     # resident, fetched once
                tile_spec(lambda i: (i, 0)),
            ],
            out_specs=tile_spec(lambda i: (i, 0)),
        ),
        compiler_params=pltpu.CompilerParams(
            dimension_semantics=("parallel",)),
    )(psum, x2)

    out_flat = out2.reshape(-1)
    if padded:
        out_flat = out_flat[:n]
    return out_flat.reshape(orig_shape)


if __name__ == "__main__":
    key = jax.random.PRNGKey(0)

    def reference(x):
        xf = x.astype(jnp.float32)
        return ((xf - jnp.mean(xf)) / jnp.std(xf, ddof=1)).astype(x.dtype)

    k1, k2, k3 = jax.random.split(key, 3)
    checks = []

    # 1) Small shape consistent with the module (batch=2, channels=4, 16x16).
    #    small_n_threshold=0 forces the Pallas path so the kernels are exercised.
    x1 = jax.random.normal(k1, (2, 4, 16, 16), dtype=jnp.float32)
    y1 = jax.block_until_ready(unit_norm(x1, small_n_threshold=0))
    checks.append((y1, reference(x1), 1e-4))

    # 2) Multi-tile path: 2-way split stats, phantom-tile clamp, (8, lanes)
    #    accumulator, 3-deep buffering, bf16 input (no f32 upcast in HBM).
    x2 = jax.random.normal(k2, (10, 16, 128), dtype=jnp.bfloat16)
    y2 = jax.block_until_ready(unit_norm(x2, tile_rows=8, small_n_threshold=0))
    checks.append((y2, reference(x2), 2e-2))

    # 3) Lane-padding fallback (element count not a multiple of 128) + ragged
    #    last row tile handled by in-kernel masking.
    x3 = jax.random.normal(k3, (4, 40, 130), dtype=jnp.float32)
    y3 = jax.block_until_ready(unit_norm(x3, tile_rows=32, small_n_threshold=0))
    checks.append((y3, reference(x3), 1e-4))

    for y, y_ref, tol in checks:
        assert y.shape == y_ref.shape, (y.shape, y_ref.shape)
        assert jnp.allclose(y.astype(jnp.float32), y_ref.astype(jnp.float32),
                            atol=tol, rtol=tol), "mismatch vs reference"

    print("KERNEL_OK")
</pallas_src>

<mosaic_0001>
module attributes {stable_mosaic.version = 11 : i64} {
  func.func @_stats_kernel(%arg0: i32, %arg1: i32, %arg2: memref<4x512xf32, #tpu.memory_space<vmem>>, %arg3: memref<1x2x1x512xf32, #tpu.memory_space<vmem>>) attributes {dimension_semantics = [#tpu.dimension_semantics<parallel>, #tpu.dimension_semantics<arbitrary>], iteration_bounds = array<i64: 1, 1>, scalar_prefetch = 0 : i64, scratch_operands = 0 : i64, tpu.core_type = #tpu.core_type<tc>, window_params = [{transform_indices = @transform_0, window_bounds = array<i64: 4, 512>}, {transform_indices = @transform_1, window_bounds = array<i64: 1, 2, 1, 512>}]} {
    %c0_i32 = arith.constant 0 : i32
    %0 = arith.cmpi eq, %arg1, %c0_i32 : i32
    %1 = arith.extui %0 : i1 to i32
    %c0_i32_0 = arith.constant 0 : i32
    %2 = arith.cmpi ne, %1, %c0_i32_0 : i32
    scf.if %2 {
      %cst_20 = arith.constant 0.000000e+00 : f32
      %30 = vector.broadcast %cst_20 : f32 to vector<1x2x1x512xf32>
      %c0_21 = arith.constant 0 : index
      %c0_22 = arith.constant 0 : index
      %c0_23 = arith.constant 0 : index
      %c0_24 = arith.constant 0 : index
      %31 = vector.load %arg3[%c0_21, %c0_22, %c0_23, %c0_24] : memref<1x2x1x512xf32, #tpu.memory_space<vmem>>, vector<1x2x1x512xf32>
      tpu.vector_store %arg3[%c0_21, %c0_22, %c0_23, %c0_24], %30 {strides = array<i32>} : memref<1x2x1x512xf32, #tpu.memory_space<vmem>>, vector<1x2x1x512xf32>,
    } else {
    }
    %c1_i32 = arith.constant 1 : i32
    %3 = arith.muli %arg0, %c1_i32 : i32
    %4 = arith.addi %3, %arg1 : i32
    %c4_i32 = arith.constant 4 : i32
    %5 = arith.muli %4, %c4_i32 : i32
    %c4_i32_1 = arith.constant 4 : i32
    %6 = arith.subi %c4_i32_1, %5 : i32
    %7 = tpu.iota {dimensions = array<i32: 0>} : vector<4x512xi32>
    %c0 = arith.constant 0 : index
    %c0_2 = arith.constant 0 : index
    %8 = vector.load %arg2[%c0, %c0_2] : memref<4x512xf32, #tpu.memory_space<vmem>>, vector<4x512xf32>
    %9 = vector.broadcast %6 : i32 to vector<4x512xi32>
    %10 = arith.cmpi slt, %7, %9 : vector<4x512xi32>
    %cst = arith.constant 0.000000e+00 : f32
    %11 = vector.broadcast %cst : f32 to vector<4x512xf32>
    %12 = arith.select %10, %8, %11 : vector<4x512xi1>, vector<4x512xf32>
    %cst_3 = arith.constant dense<0.000000e+00> : vector<512xf32>
    %13 = vector.multi_reduction <add>, %12, %cst_3 [0] : vector<4x512xf32> to vector<512xf32>
    %14 = vector.shape_cast %13 : vector<512xf32> to vector<1x512xf32>
    %15 = arith.mulf %12, %12 : vector<4x512xf32>
    %cst_4 = arith.constant dense<0.000000e+00> : vector<512xf32>
    %16 = vector.multi_reduction <add>, %15, %cst_4 [0] : vector<4x512xf32> to vector<512xf32>
    %17 = vector.shape_cast %16 : vector<512xf32> to vector<1x512xf32>
    %c0_5 = arith.constant 0 : index
    %c0_6 = arith.constant 0 : index
    %c0_7 = arith.constant 0 : index
    %c0_8 = arith.constant 0 : index
    %18 = vector.load %arg3[%c0_5, %c0_6, %c0_7, %c0_8] : memref<1x2x1x512xf32, #tpu.memory_space<vmem>>, vector<1x1x1x512xf32>
    %19 = vector.shape_cast %18 : vector<1x1x1x512xf32> to vector<1x512xf32>
    %20 = arith.addf %19, %14 : vector<1x512xf32>
    %c0_9 = arith.constant 0 : index
    %c0_10 = arith.constant 0 : index
    %c0_11 = arith.constant 0 : index
    %c0_12 = arith.constant 0 : index
    %21 = vector.load %arg3[%c0_9, %c0_10, %c0_11, %c0_12] : memref<1x2x1x512xf32, #tpu.memory_space<vmem>>, vector<1x1x1x512xf32>
    %22 = vector.shape_cast %21 : vector<1x1x1x512xf32> to vector<1x512xf32>
    %23 = vector.shape_cast %20 : vector<1x512xf32> to vector<1x1x1x512xf32>
    tpu.vector_store %arg3[%c0_9, %c0_10, %c0_11, %c0_12], %23 {strides = array<i32>} : memref<1x2x1x512xf32, #tpu.memory_space<vmem>>, vector<1x1x1x512xf32>,
    %c0_13 = arith.constant 0 : index
    %c1 = arith.constant 1 : index
    %c0_14 = arith.constant 0 : index
    %c0_15 = arith.constant 0 : index
    %24 = vector.load %arg3[%c0_13, %c1, %c0_14, %c0_15] : memref<1x2x1x512xf32, #tpu.memory_space<vmem>>, vector<1x1x1x512xf32>
    %25 = vector.shape_cast %24 : vector<1x1x1x512xf32> to vector<1x512xf32>
    %26 = arith.addf %25, %17 : vector<1x512xf32>
    %c0_16 = arith.constant 0 : index
    %c1_17 = arith.constant 1 : index
    %c0_18 = arith.constant 0 : index
    %c0_19 = arith.constant 0 : index
    %27 = vector.load %arg3[%c0_16, %c1_17, %c0_18, %c0_19] : memref<1x2x1x512xf32, #tpu.memory_space<vmem>>, vector<1x1x1x512xf32>
    %28 = vector.shape_cast %27 : vector<1x1x1x512xf32> to vector<1x512xf32>
    %29 = vector.shape_cast %26 : vector<1x512xf32> to vector<1x1x1x512xf32>
    tpu.vector_store %arg3[%c0_16, %c1_17, %c0_18, %c0_19], %29 {strides = array<i32>} : memref<1x2x1x512xf32, #tpu.memory_space<vmem>>, vector<1x1x1x512xf32>,
    return
  }
  func.func @transform_0(%arg0: i32, %arg1: i32) -> (i32, i32) {
    %c1_i32 = arith.constant 1 : i32
    %0 = arith.muli %arg0, %c1_i32 : i32
    %1 = arith.addi %0, %arg1 : i32
    %c0_i32 = arith.constant 0 : i32
    %2 = arith.minsi %1, %c0_i32 : i32
    %c0_i32_0 = arith.constant 0 : i32
    %c0_i32_1 = arith.constant 0 : i32
    return %2, %c0_i32_0 : i32, i32
  }
  func.func @transform_1(%arg0: i32, %arg1: i32) -> (i32, i32, i32, i32) {
    %c0_i32 = arith.constant 0 : i32
    %c0_i32_0 = arith.constant 0 : i32
    %c0_i32_1 = arith.constant 0 : i32
    %c0_i32_2 = arith.constant 0 : i32
    return %arg0, %c0_i32, %c0_i32_0, %c0_i32_1 : i32, i32, i32, i32
  }
}

</mosaic_0001>

<bundles_post_ra>
// kernel: tpu_custom_call.1
= control target key start
LH: loop header
LB: loop body
LE: loop exit
PB: predicated region body
PF: predicated region fallthrough
CT: control target
= control target key end

     0   :  { %6 = vsyncpa [#allocation3], 0  ;;  %s290_s0 = inlined_call_operand.hbm [shape: f32[4,512], index: 0, kind: input, shape index: {}]   ;;  %s291_s1 = inlined_call_operand.hbm [shape: f32[1,2,1,512], index: 1, kind: output, shape index: {}]  }
   0x1   :  { %7 = vsyncpa [#allocation4], 0  ;;  %s19_s8 = sshll.u32 %s290_s0, 4  ;;  %s243_s9 = smov [#allocation2]   ;;  %s20_s8 = int_to_ptr.hbm [resolvable:$true] %s19_s8 }
   0x2   :  { %s21_s10 = sshll.u32 %s243_s9, 4  ;;  %s22_s10 = int_to_ptr.vmem [resolvable:$true] %s21_s10 }
   0x3   :  { %24 = dma.hbm_to_vmem [thread:$0]  %s20_s8, 256, %s22_s10, [#allocation3]  }
   0x4   :  { %239 = dma.done.wait [#allocation3], 256  }
   0x5   :  { %240 = vsyncadd [#allocation3], 4294967040  ;;  %v36_v0 = vlaneseq  ;;  %v244_v2 = vmov 0.0   ;;  %v47_v3 = vld [vmem:[#allocation2] sm:$0xff]  ;;  %v48_v4 = vld [vmem:[#allocation2 + $0x8] sm:$0xff]  ;;  %vm68_vm2 = vcmask 1043456  }
   0x6   :  { %53 = vst [vmem:[#allocation1] ss:$2 sm:$0xff] %v47_v3  ;;  %vm137_vm3 = vcmask 1040384   ;;  %vm139_vm4 = vcmask 1042434   ;;  %vm141_vm5 = vcmask 1041408   ;;  %s245_s0 = smov [#allocation5]  }
   0x7   :  { %vm261_vm0 = vcmp.lt.s32.totalorder %v36_v0, 512  ;;  %55 = vst [vmem:[#allocation1 + $0x10] ss:$2 sm:$0xff] %v48_v4  ;;  %v46_v5 = vshrl.u32 %v36_v0, 7  ;;  %s169_s11 = sshll.u32 %s245_s0, 4  ;;  %s171_s14 = sshll.u32 %s291_s1, 4  ;;  %s170_s11 = int_to_ptr.vmem [resolvable:$true] %s169_s11  ;;  %s172_s14 = int_to_ptr.hbm [resolvable:$true] %s171_s14 }
   0x8   :  { %40 = vst.msk [vmem:[#allocation5] sm:$0xf] %vm261_vm0, %v244_v2  ;;  %s246_s15 = smov 64   ;;  %s247_s16 = smov 4  }
   0x9   :  { %41 = vst.msk [vmem:[#allocation5 + $0x4] sm:$0xf] %vm261_vm0, %v244_v2  ;;  %vm50_vm1 = vcmp.lt.s32.totalorder %v46_v5, 4 }
   0xd   :  { %v56_v6 = vld.sshfl [vmem:[#allocation1] sm:$0xff pattern:$0x75316420]  ;;  %v57_v7 = vld.sshfl [vmem:[#allocation1 + $0x8] sm:$0xff pattern:$0x75316420] }
   0xe   :  { %v58_v8 = vld.sshfl [vmem:[#allocation1 + $0x10] sm:$0xff pattern:$0x75316420]  ;;  %v59_v9 = vld.sshfl [vmem:[#allocation1 + $0x18] sm:$0xff pattern:$0x75316420] }
   0xf   :  { %v64_v10 = vsel %vm50_vm1, %v56_v6, 0.0  ;;  %v65_v11 = vsel %vm50_vm1, %v57_v7, 0.0  ;;  %v66_v12 = vsel %vm50_vm1, %v58_v8, 0.0  ;;  %v67_v13 = vsel %vm50_vm1, %v59_v9, 0.0  ;;  %v129_v6 = vld [vmem:[#allocation5] sm:$0xf] }
  0x10   :  { %v69_v14 = vsel %vm68_vm2, %v64_v10, 0.0  ;;  %v76_v15 = vsel %vm68_vm2, %v65_v11, 0.0  ;;  %v83_v16 = vsel %vm68_vm2, %v66_v12, 0.0  ;;  %v90_v17 = vsel %vm68_vm2, %v67_v13, 0.0 }
  0x11   :  { %v70_v18 = vrot.slane %v69_v14, 4  ;;  %v77_v19 = vrot.slane %v76_v15, 4  ;;  %v84_v20 = vrot.slane %v83_v16, 4  ;;  %v91_v21 = vrot.slane %v90_v17, 4 }
  0x12   :  { %v97_v22 = vmul.f32 %v64_v10, %v64_v10  ;;  %v98_v23 = vmul.f32 %v65_v11, %v65_v11  ;;  %v99_v24 = vmul.f32 %v66_v12, %v66_v12  ;;  %v100_v25 = vmul.f32 %v67_v13, %v67_v13 }
  0x13   :  { %v71_v26 = vadd.f32 %v70_v18, %v69_v14  ;;  %v78_v27 = vadd.f32 %v77_v19, %v76_v15  ;;  %v85_v28 = vadd.f32 %v84_v20, %v83_v16  ;;  %v92_v29 = vadd.f32 %v91_v21, %v90_v17 }
  0x14   :  { %v101_v30 = vsel %vm68_vm2, %v97_v22, 0.0  ;;  %v108_v31 = vsel %vm68_vm2, %v98_v23, 0.0  ;;  %v115_v32 = vsel %vm68_vm2, %v99_v24, 0.0  ;;  %v122_v33 = vsel %vm68_vm2, %v100_v25, 0.0  ;;  %v151_v22 = vld [vmem:[#allocation5 + $0x4] sm:$0xf] }
  0x15   :  { %v72_v34 = vrot.slane %v71_v26, 2  ;;  %v79_v35 = vrot.slane %v78_v27, 2  ;;  %v86_v36 = vrot.slane %v85_v28, 2  ;;  %v93_v37 = vrot.slane %v92_v29, 2 }
  0x16   :  { %v102_v38 = vrot.slane %v101_v30, 4  ;;  %v109_v39 = vrot.slane %v108_v31, 4  ;;  %v116_v40 = vrot.slane %v115_v32, 4  ;;  %v123_v41 = vrot.slane %v122_v33, 4 }
  0x17   :  { %v73_v42 = vadd.f32 %v72_v34, %v71_v26  ;;  %v80_v43 = vadd.f32 %v79_v35, %v78_v27  ;;  %v87_v44 = vadd.f32 %v86_v36, %v85_v28  ;;  %v94_v45 = vadd.f32 %v93_v37, %v92_v29 }
  0x18   :  { %v103_v46 = vadd.f32 %v102_v38, %v101_v30  ;;  %v110_v47 = vadd.f32 %v109_v39, %v108_v31  ;;  %v117_v48 = vadd.f32 %v116_v40, %v115_v32  ;;  %v124_v49 = vadd.f32 %v123_v41, %v122_v33 }
  0x19   :  { %v74_v50 = vrot.slane %v73_v42, 1  ;;  %v81_v51 = vrot.slane %v80_v43, 1  ;;  %v88_v52 = vrot.slane %v87_v44, 1  ;;  %v95_v53 = vrot.slane %v94_v45, 1 }
  0x1a   :  { %v104_v54 = vrot.slane %v103_v46, 2  ;;  %v111_v55 = vrot.slane %v110_v47, 2  ;;  %v118_v56 = vrot.slane %v117_v48, 2  ;;  %v125_v57 = vrot.slane %v124_v49, 2 }
  0x1b   :  { %v82_v58 = vadd.f32 %v81_v51, %v80_v43  ;;  %v89_v59 = vadd.f32 %v88_v52, %v87_v44  ;;  %v96_v60 = vadd.f32 %v95_v53, %v94_v45  ;;  %v75_v2 = vadd.f32 %v74_v50, %v73_v42 }
  0x1c   :  { %v105_v61 = vadd.f32 %v104_v54, %v103_v46  ;;  %v112_v62 = vadd.f32 %v111_v55, %v110_v47  ;;  %v119_v63 = vadd.f32 %v118_v56, %v117_v48  ;;  %v126_v0 = vadd.f32 %v125_v57, %v124_v49 }
  0x1d   :  { %v134_v3 = vrot.slane %v82_v58, 7  ;;  %v135_v4 = vrot.slane %v89_v59, 6  ;;  %v136_v5 = vrot.slane %v96_v60, 5 }
  0x1e   :  { %v106_v7 = vrot.slane %v105_v61, 1  ;;  %v113_v8 = vrot.slane %v112_v62, 1  ;;  %v120_v9 = vrot.slane %v119_v63, 1  ;;  %v127_v10 = vrot.slane %v126_v0, 1 }
  0x1f   :  { %v138_v11 = vsel %vm137_vm3, %v75_v2, %v134_v3  ;;  %v140_v12 = vsel %vm139_vm4, %v135_v4, %v136_v5 }
  0x20   :  { %v142_v13 = vsel %vm141_vm5, %v138_v11, %v140_v12  ;;  %v114_v14 = vadd.f32 %v113_v8, %v112_v62  ;;  %v121_v15 = vadd.f32 %v120_v9, %v119_v63  ;;  %v128_v17 = vadd.f32 %v127_v10, %v126_v0 }
  0x21   :  { %v144_v16 = vadd.f32 %v142_v13, %v129_v6  ;;  %v107_v18 = vadd.f32 %v106_v7, %v105_v61 }
  0x22   :  { %v156_v19 = vrot.slane %v114_v14, 7  ;;  %v157_v20 = vrot.slane %v121_v15, 6  ;;  %v158_v21 = vrot.slane %v128_v17, 5 }
  0x23   :  { %149 = vst.msk [vmem:[#allocation5] sm:$0xf] %vm261_vm0, %v144_v16 }
  0x24   :  { %v159_v23 = vsel %vm137_vm3, %v107_v18, %v156_v19  ;;  %v160_v24 = vsel %vm139_vm4, %v157_v20, %v158_v21 }
  0x25   :  { %v161_v25 = vsel %vm141_vm5, %v159_v23, %v160_v24 }
  0x26   :  { %v163_v26 = vadd.f32 %v161_v25, %v151_v22 }
  0x28   :  { %164 = vst.msk [vmem:[#allocation5 + $0x4] sm:$0xf] %vm261_vm0, %v163_v26 }
  0x29   :  { %177 = dma.vmem_to_hbm [thread:$0]  %s170_s11, 128, %s172_s14, [#allocation4], %s246_s15, %s246_s15, %s247_s16  }
  0x2a   :  { %241 = dma.done.wait [#allocation4], 128  }
  0x2b   :  { %242 = vsyncadd [#allocation4], 4294967168 }
  0x2c   :  { %182 = vsyncpa [#allocation3], 1 }
  0x2d   :  { %183 = vsyncpa [#allocation4], 1 }

</bundles_post_ra>
